<compile_context>
chip_gen: v7x
topology: tpu7x:2x2x1
jax: 0.10.0
libtpu: 0.0.40
codegen_flags: <defaults>
</compile_context>

<pallas_src>
import functools
import math

import jax
import jax.numpy as jnp
from jax import lax
from jax.experimental import pallas as pl
from jax.experimental.pallas import tpu as pltpu


def _round_up(x, m):
    return ((x + m - 1) // m) * m


def _cdiv(a, b):
    return (a + b - 1) // b


def _masked_l1_partial_kernel(mask_ref, pred_ref, gt_ref, psum_ref, *, n_rows):
    """One (col_block, row_block) grid step: partial sum of |pred-gt|*mask.

    mask_ref : (1, thw)       f32 in {0,1}; 0 on the border AND past HW (lane tail)
    pred_ref : (tn, thw)      input dtype; tail blocks hold garbage past N / HW
    gt_ref   : (tn, thw)      input dtype
    psum_ref : (1, 1, 8, 128) f32; partial sum broadcast, read back at [..., 0, 0]
    """
    i = pl.program_id(1)                               # row-block index (inner axis)
    tn, thw = pred_ref.shape

    p = pred_ref[...].astype(jnp.float32)
    g = gt_ref[...].astype(jnp.float32)
    m = mask_ref[...]                                  # (1, thw), broadcasts over rows

    # Validity = not past N (row tail) AND mask==1 (border + lane tail, since the
    # mask row is zero-padded to the grid's lane extent). jnp.where (a select)
    # discards any NaN/Inf arising from garbage data in out-of-bounds regions.
    row_ids = i * tn + lax.broadcasted_iota(jnp.int32, (tn, thw), 0)
    valid = (row_ids < n_rows) & (m > 0.5)
    masked = jnp.where(valid, jnp.abs(p - g), 0.0)     # (tn, thw)

    # Two-stage reduction: sublane-axis partials first, then one cross-lane
    # reduce per multi-MiB block (amortized XLU; free under the DMA).
    col = jnp.sum(masked, axis=0, keepdims=True)       # (1, thw)
    s = jnp.sum(col)                                   # scalar
    psum_ref[...] = jnp.broadcast_to(s, (1, 1, 8, 128))


def masked_l1_sum_pallas(pred, gt, mask_row_hw, *,
                         target_tile_bytes=6 << 20,
                         vmem_limit_bytes=48 * 1024 * 1024):
    """Returns sum(|pred - gt| * mask) where pred/gt are (N, HW) (any float/int
    dtype) and mask_row_hw is a per-plane (HW,) mask shared by all N rows."""
    N, HW = pred.shape
    itemsize = jnp.dtype(pred.dtype).itemsize
    sub = max(8, 32 // itemsize)               # sublane multiple: 8 f32 / 16 bf16 / 32 int8

    # Lane-axis (HW) block: multiple of 128, capped so a (sub, thw) slab stays
    # under target_tile_bytes -> block bytes are frame-size independent.
    thw_cap = max(128, ((target_tile_bytes // (sub * itemsize)) // 128) * 128)
    thw = min(_round_up(HW, 128), thw_cap)
    num_col_blocks = _cdiv(HW, thw)

    # Row block: dtype-aware sublane multiple, ~target_tile_bytes per input.
    tn = max(sub, ((target_tile_bytes // (thw * itemsize)) // sub) * sub)
    tn = min(tn, _round_up(N, sub))
    # Megacore (v7x): keep >= 2 grid blocks whenever the row axis can split.
    if num_col_blocks * _cdiv(N, tn) < 2 and N > sub:
        tn = min(tn, _round_up(_cdiv(N, 2), sub))
    num_row_blocks = _cdiv(N, tn)

    # Only the tiny per-plane mask row is padded (HW*4 bytes, negligible); the
    # two big inputs are consumed unpadded — tail blocks are masked in-kernel.
    mask_row = mask_row_hw.astype(jnp.float32).reshape(1, HW)
    hw_pad = num_col_blocks * thw
    if hw_pad != HW:
        mask_row = jnp.pad(mask_row, ((0, 0), (0, hw_pad - HW)))

    cost = pl.CostEstimate(
        flops=3 * N * HW,
        transcendentals=0,
        bytes_accessed=(2 * N * HW * itemsize + hw_pad * 4
                        + num_row_blocks * num_col_blocks * 8 * 128 * 4),
    )

    kernel = functools.partial(_masked_l1_partial_kernel, n_rows=N)

    psums = pl.pallas_call(
        kernel,
        out_shape=jax.ShapeDtypeStruct(
            (num_row_blocks, num_col_blocks, 8, 128), jnp.float32),
        grid_spec=pltpu.PrefetchScalarGridSpec(
            num_scalar_prefetch=0,
            # Columns outermost, rows innermost: the mask block (0, j) is
            # revisited for the whole inner row sweep -> fetched once per stripe.
            grid=(num_col_blocks, num_row_blocks),
            in_specs=[
                pl.BlockSpec((1, thw), lambda j, i: (0, j)),    # mask slice
                pl.BlockSpec((tn, thw), lambda j, i: (i, j)),   # pred block
                pl.BlockSpec((tn, thw), lambda j, i: (i, j)),   # gt block
            ],
            out_specs=pl.BlockSpec((1, 1, 8, 128), lambda j, i: (i, j, 0, 0)),
        ),
        compiler_params=pltpu.CompilerParams(
            dimension_semantics=("parallel", "parallel"),
            vmem_limit_bytes=vmem_limit_bytes),
        cost_estimate=cost,
    )(mask_row, pred, gt)

    return jnp.sum(psums[:, :, 0, 0])


def loss_recursive_simple_forward(gt_frame_for_loss, clean_frame_for_loss,
                                  lambda_time=1.0, non_valid_border_size=2,
                                  materialize_valid_mask=False):
    """Pallas port of Loss_Recursive_Simple.forward loss math.

    Returns (total_loss, valid_mask) where
      total_loss = lambda_time * MaskedL1Loss(gt, pred, valid_mask) * 10
      valid_mask = valid-center border mask (bool). By default only the (H, W)
      plane is returned (it is identical for every b/t/c); pass
      materialize_valid_mask=True to get the fully broadcast tensor.
    """
    assert gt_frame_for_loss.shape == clean_frame_for_loss.shape
    shape = clean_frame_for_loss.shape
    assert len(shape) in (4, 5), "expects (B,C,H,W) or (B,T,C,H,W)"
    H, W = shape[-2], shape[-1]
    b = int(non_valid_border_size)
    assert 2 * b < H and 2 * b < W, "border too large: mask sum would be zero"
    N = int(math.prod(shape[:-2]))

    pred2 = clean_frame_for_loss.reshape(N, H * W)
    gt2 = gt_frame_for_loss.reshape(N, H * W)

    # Valid-center mask for a single (H, W) plane (same for every b,t,c).
    h_idx = jnp.arange(H)[:, None]
    w_idx = jnp.arange(W)[None, :]
    mask_hw = ((h_idx >= b) & (h_idx < H - b) &
               (w_idx >= b) & (w_idx < W - b))

    loss_sum = masked_l1_sum_pallas(pred2, gt2, mask_hw.reshape(H * W))

    # Analytic mask sum: N * (H-2b) * (W-2b) — no in-kernel mask reduction.
    mask_sum = float(N * (H - 2 * b) * (W - 2 * b))
    # TODO(synk): RapidBase MaskedL1Loss normalization assumed to be the masked
    # mean (sum / mask_sum); confirm against TrainingCore.losses.MaskedL1Loss.
    l1_loss = loss_sum / mask_sum
    total_loss = 1.0 * lambda_time * l1_loss * 10.0

    if materialize_valid_mask:
        valid_mask = jnp.broadcast_to(mask_hw, shape)
    else:
        valid_mask = mask_hw          # analytically reconstructible; saves HBM
    return total_loss, valid_mask


def _reference_total_loss(gt, pred, lambda_time, border):
    """Pure-JAX reference for correctness checking (upcasts like the kernel)."""
    shape = pred.shape
    H, W = shape[-2], shape[-1]
    h_idx = jnp.arange(H)[:, None]
    w_idx = jnp.arange(W)[None, :]
    mask = ((h_idx >= border) & (h_idx < H - border) &
            (w_idx >= border) & (w_idx < W - border)).astype(jnp.float32)
    mask = jnp.broadcast_to(mask, shape)
    diff = jnp.abs(pred.astype(jnp.float32) - gt.astype(jnp.float32))
    l1 = jnp.sum(diff * mask) / jnp.sum(mask)
    return lambda_time * l1 * 10.0


if __name__ == "__main__":
    base_key = jax.random.PRNGKey(0)

    cases = [
        # (shape,               dtype,        border, lambda_time, rtol)
        ((2, 3, 3, 16, 16), jnp.float32,  2, 0.5, 1e-5),   # even tiles
        ((2, 2, 3, 16, 20), jnp.float32,  1, 1.0, 1e-5),   # row + lane tails
        ((2, 3, 3, 16, 16), jnp.bfloat16, 2, 0.5, 1e-4),   # packed-dtype tiling
    ]

    gt = clean = None
    for idx, (shape, dtype, border, lam, rtol) in enumerate(cases):
        k1, k2 = jax.random.split(jax.random.fold_in(base_key, idx))
        clean = jax.random.normal(k1, shape, jnp.float32).astype(dtype)
        gt = jax.random.normal(k2, shape, jnp.float32).astype(dtype)

        total_loss, valid_mask = loss_recursive_simple_forward(
            gt, clean, lambda_time=lam, non_valid_border_size=border)
        total_loss = jax.block_until_ready(total_loss)

        ref = _reference_total_loss(gt, clean, lam, border)
        assert jnp.allclose(total_loss, ref, rtol=rtol, atol=1e-6), \
            (idx, float(total_loss), float(ref))
        assert valid_mask.shape == shape[-2:]
        assert valid_mask.dtype == jnp.bool_

    # Full-shape mask still available for consumers that need it.
    tl, full_mask = loss_recursive_simple_forward(
        gt, clean, lambda_time=0.5, non_valid_border_size=2,
        materialize_valid_mask=True)
    jax.block_until_ready(tl)
    assert full_mask.shape == cases[-1][0]
    assert full_mask.dtype == jnp.bool_

    print("KERNEL_OK")
</pallas_src>

<mosaic_0001>
module attributes {stable_mosaic.version = 11 : i64} {
  func.func @_masked_l1_partial_kernel(%arg0: i32, %arg1: i32, %arg2: memref<1x256xf32, #tpu.memory_space<vmem>>, %arg3: memref<16x256xf32, #tpu.memory_space<vmem>>, %arg4: memref<16x256xf32, #tpu.memory_space<vmem>>, %arg5: memref<1x1x8x128xf32, #tpu.memory_space<vmem>>) attributes {dimension_semantics = [#tpu.dimension_semantics<parallel>, #tpu.dimension_semantics<parallel>], iteration_bounds = array<i64: 1, 2>, scalar_prefetch = 0 : i64, scratch_operands = 0 : i64, tpu.core_type = #tpu.core_type<tc>, window_params = [{transform_indices = @transform_0, window_bounds = array<i64: 1, 256>}, {transform_indices = @transform_1, window_bounds = array<i64: 16, 256>}, {transform_indices = @transform_2, window_bounds = array<i64: 16, 256>}, {transform_indices = @transform_3, window_bounds = array<i64: 1, 1, 8, 128>}]} {
    %c0 = arith.constant 0 : index
    %c0_0 = arith.constant 0 : index
    %0 = vector.load %arg3[%c0, %c0_0] : memref<16x256xf32, #tpu.memory_space<vmem>>, vector<16x256xf32>
    %c0_1 = arith.constant 0 : index
    %c0_2 = arith.constant 0 : index
    %1 = vector.load %arg4[%c0_1, %c0_2] : memref<16x256xf32, #tpu.memory_space<vmem>>, vector<16x256xf32>
    %c0_3 = arith.constant 0 : index
    %c0_4 = arith.constant 0 : index
    %2 = vector.load %arg2[%c0_3, %c0_4] : memref<1x256xf32, #tpu.memory_space<vmem>>, vector<1x256xf32>
    %c16_i32 = arith.constant 16 : i32
    %3 = arith.muli %arg1, %c16_i32 : i32
    %4 = tpu.iota {dimensions = array<i32: 0>} : vector<16x256xi32>
    %5 = vector.broadcast %3 : i32 to vector<16x256xi32>
    %6 = arith.addi %5, %4 : vector<16x256xi32>
    %c18_i32 = arith.constant 18 : i32
    %7 = vector.broadcast %c18_i32 : i32 to vector<16x256xi32>
    %8 = arith.cmpi slt, %6, %7 : vector<16x256xi32>
    %cst = arith.constant 5.000000e-01 : f32
    %9 = vector.broadcast %cst : f32 to vector<1x256xf32>
    %10 = arith.cmpf ogt, %2, %9 : vector<1x256xf32>
    %11 = vector.broadcast %10 : vector<1x256xi1> to vector<16x256xi1>
    %12 = arith.andi %8, %11 : vector<16x256xi1>
    %13 = arith.subf %0, %1 : vector<16x256xf32>
    %14 = math.absf %13 : vector<16x256xf32>
    %cst_5 = arith.constant 0.000000e+00 : f32
    %15 = vector.broadcast %cst_5 : f32 to vector<16x256xf32>
    %16 = arith.select %12, %14, %15 : vector<16x256xi1>, vector<16x256xf32>
    %cst_6 = arith.constant dense<0.000000e+00> : vector<256xf32>
    %17 = vector.multi_reduction <add>, %16, %cst_6 [0] : vector<16x256xf32> to vector<256xf32>
    %18 = vector.shape_cast %17 : vector<256xf32> to vector<1x256xf32>
    %19 = vector.shape_cast %18 : vector<1x256xf32> to vector<1x1x256xf32>
    %cst_7 = arith.constant dense<0.000000e+00> : vector<1xf32>
    %20 = vector.multi_reduction <add>, %19, %cst_7 [1, 2] : vector<1x1x256xf32> to vector<1xf32>
    %21 = vector.shape_cast %20 : vector<1xf32> to vector<1x1x1xf32>
    %22 = vector.extract %21[0, 0, 0] : f32 from vector<1x1x1xf32>
    %23 = vector.broadcast %22 : f32 to vector<1x1x8x128xf32>
    %c0_8 = arith.constant 0 : index
    %c0_9 = arith.constant 0 : index
    %c0_10 = arith.constant 0 : index
    %c0_11 = arith.constant 0 : index
    %24 = vector.load %arg5[%c0_8, %c0_9, %c0_10, %c0_11] : memref<1x1x8x128xf32, #tpu.memory_space<vmem>>, vector<1x1x8x128xf32>
    tpu.vector_store %arg5[%c0_8, %c0_9, %c0_10, %c0_11], %23 {strides = array<i32>} : memref<1x1x8x128xf32, #tpu.memory_space<vmem>>, vector<1x1x8x128xf32>,
    return
  }
  func.func @transform_0(%arg0: i32, %arg1: i32) -> (i32, i32) {
    %c0_i32 = arith.constant 0 : i32
    %c0_i32_0 = arith.constant 0 : i32
    return %c0_i32, %arg0 : i32, i32
  }
  func.func @transform_1(%arg0: i32, %arg1: i32) -> (i32, i32) {
    %c0_i32 = arith.constant 0 : i32
    return %arg1, %arg0 : i32, i32
  }
  func.func @transform_2(%arg0: i32, %arg1: i32) -> (i32, i32) {
    %c0_i32 = arith.constant 0 : i32
    return %arg1, %arg0 : i32, i32
  }
  func.func @transform_3(%arg0: i32, %arg1: i32) -> (i32, i32, i32, i32) {
    %c0_i32 = arith.constant 0 : i32
    %c0_i32_0 = arith.constant 0 : i32
    %c0_i32_1 = arith.constant 0 : i32
    return %arg1, %arg0, %c0_i32, %c0_i32_0 : i32, i32, i32, i32
  }
}

</mosaic_0001>

<bundles_post_ra>
// kernel: tpu_custom_call.1
= control target key start
LH: loop header
LB: loop body
LE: loop exit
PB: predicated region body
PF: predicated region fallthrough
CT: control target
= control target key end

     0   :  { %s1085_s0 = inlined_call_operand.hbm [shape: f32[1,256], index: 0, kind: input, shape index: {}]   ;;  %s1086_s1 = inlined_call_operand.hbm [shape: f32[18,256], index: 1, kind: input, shape index: {}]   ;;  %s1087_s2 = inlined_call_operand.hbm [shape: f32[18,256], index: 2, kind: input, shape index: {}]   ;;  %s1088_s3 = inlined_call_operand.hbm [shape: f32[2,1,8,128], index: 3, kind: output, shape index: {}]  }
   0x1   :  { %1093 = sst [smem:[#allocation12_spill]] %s1085_s0 }
   0x2   :  { %8 = vsyncpa [#allocation3], 0 }
   0x3   :  { %9 = vsyncpa [#allocation6], 0 }
   0x4   :  { %11 = vsyncpa [#allocation6 + $0x1], 0 }
   0x5   :  { %12 = vsyncpa [#allocation4], 0 }
   0x6   :  { %14 = vsyncpa [#allocation4 + $0x1], 0  ;;  %s824_s12 = smov 0   ;;  %s826_s13 = smov 0  }
   0x7   :  { %s828_s14 = smov 0   ;;  %s830_s15 = smov 0  }
   0x8   :  { %s832_s16 = smov 0   ;;  %s834_s17 = smov 0  }
   0x9 LB: > { %s855_s18 = sadd.s32 4294967295, %s793_s17   ;;  %s510_s19 = sadd.s32 4294967294, %s793_s17   ;;  %s793_s17 = sphi %s834_s17, %s20_s17   ;;  %s789_s16 = sphi %s832_s16, %s1113_s16   ;;  %s785_s15 = sphi %s830_s15, %s1112_s15   ;;  %s781_s14 = sphi %s828_s14, %s1111_s14   ;;  %s777_s13 = sphi %s826_s13, %s1110_s13   ;;  %s773_s12 = sphi %s824_s12, %s1109_s12  }
   0xa   : > { %s29_s20 = sadd.s32 1, %s789_s16  ;;  %s67_s21 = sadd.s32 1, %s781_s14 }
   0xb   : > { %p30_p0 = scmp.ge.s32.totalorder %s29_s20, 2  ;;  %p74_p1 = scmp.ne.s32.totalorder %s781_s14, %s777_s13 }
   0xc   : > { %p75_p2 = scmp.eq.s32.totalorder %s793_s17, 0  ;;  %p80_p3 = scmp.ne.s32.totalorder %s777_s13, %s773_s12 }
   0xd   : > { %s1115_s20 = smov (%p30_p0, %s29_s20), 0  ;;  %p1089_p5 = scmp.eq.s32.totalorder %s855_s18, 0 }
   0xe   : > { %p867_p4 = por %p75_p2, %p74_p1  ;;  %s62_s23 = ssub.s32 %s789_s16, %s1115_s20 }
   0xf   : > { %p134_p6 = scmp.eq.s32.totalorder %s855_s18, 1  ;;  %p65_p7 = scmp.eq.s32.totalorder %s62_s23, 0 }
  0x10   : > { %s1094_s22 = scalar_select %p867_p4, 1, 0 }
  0x11   : > { %p877_p8 = por %p1089_p5, %p80_p3  ;;  %p881_p9 = por %p134_p6, %p74_p1 }
  0x12   : > { %p140_p10 = scmp.eq.s32.totalorder %s510_s19, 1  ;;  %p511_p12 = scmp.ge.s32.totalorder %s793_s17, 1 }
  0x13   : > { %s1095_s24 = scalar_select %p877_p8, 1, 0 }
  0x14   : > { %s1096_s25 = scalar_select %p881_p9, 1, 0 }
  0x15   : > { %s886_s26 = scalar_select %p65_p7, %s781_s14, %s67_s21  }
  0x16   : > { %p888_p11 = por %p140_p10, %p80_p3  ;;  %p147_p13 = scmp.lt.s32.totalorder %s793_s17, 3 }
  0x17   : > { %s795_s29 = smov [#allocation2]   ;;  %s1100_s0 = sld [smem:[#allocation12_spill]] }
  0x18   : > { %s1097_s27 = scalar_select %p888_p11, 1, 0 }
  0x19   : > { %p894_p0 = pnand %p511_p12, %p147_p13  ;;  %s163_s30 = sshll.u32 %s795_s29, 4  ;;  %s164_s30 = int_to_ptr.vmem [resolvable:$true] %s163_s30 }
  0x1b   : > { %s1098_s28 = scalar_select %p894_p0, 1, 0 }
  0x1c   : > { %p558_p1 = pneg %p894_p0 }
  0x1d   : > { %s623_s7 = scalar_lea.hbm %s1100_s0, 32 }
  0x1e   : > { %p902_p2 = pnand %p558_p1, %p1089_p5  ;;  %p624_p3 = scmp.ne.s32.totalorder %s1100_s0, %s623_s7 }
  0x1f   : > { %p630_p12 = scmp.lt.u32.totalorder %s623_s7, %s1100_s0 }
  0x20   : > { %p625_p6 = pneg %p902_p2 }
  0x22   : > { %p626_p7 = pnand %p625_p6, %p624_p3 }
  0x24   : > { %p627_p10 = pneg %p626_p7 }
  0x26   : > { %p632_p13 = pnand %p630_p12, %p627_p10 }
  0x28   : > { %635 = shalt.err (!%p632_p13)
}
  0x29   : > { %s636_s19 = scalar_lea.vmem %s164_s30, 32  ;;  %p644_p9 = scmp.lt.s32.totalorder %s164_s30, %s164_s30 }
  0x2a   : > { %p637_p1 = scmp.ne.s32.totalorder %s164_s30, %s636_s19  ;;  %p645_p8 = scmp.lt.s32.totalorder %s636_s19, %s636_s19 }
  0x2c   : > { %p639_p5 = pnand %p637_p1, %p625_p6  ;;  %p646_p0 = por %p645_p8, %p644_p9 }
  0x2e   : > { %p640_p11 = pneg %p639_p5 }
  0x30   : > { %p647_p4 = pnand %p646_p0, %p640_p11 }
  0x32   : > { %650 = shalt.err (!%p647_p4)
}
  0x33   : > { %561 = dma.hbm_to_vmem [thread:$0]  (!%p902_p2), %s1100_s0, 32, %s164_s30, [#allocation3]  }
  0x34   : > { %p513_p3 = scmp.ge.s32.totalorder %s793_s17, 2 }
  0x35   : > { %p1101_p7 = scmp.ne.s32.totalorder (!%p513_p3), %s1094_s22, 0 }
  0x36   : > { %170 = sbr.rel (%p513_p3) target bundleno = 133 (0x85), region = 20 }
  0x3d   : > { %173 = sbr.rel (!%p1101_p7) target bundleno = 96 (0x60), region = 24  ;;  %s174_s29 = sand.u32 (%p1101_p7), 1, %s793_s17  }
  0x3e   : > { %s176_s5 = sand.u32 (%p1101_p7), 1, %s781_s14   ;;  %s515_s7 = sshll.u32 (%p1101_p7), %s789_s16, 1 }
  0x3f   : > { %s514_s6 = sshll.u32 (%p1101_p7), %s176_s5, 5  ;;  %s181_s4 = ssub.s32 (%p1101_p7), 3, %s515_s7 }
  0x40   : > { %p182_p4 = scmp.lt.s32.totalorder (%p1101_p7), %s181_s4, 2  ;;  %s933_s9 = scalar_lea.sflag (%p1101_p7), [#allocation6], %s174_s29 }
  0x41   : > { %s178_s10 = scalar_lea.vmem (%p1101_p7), [#allocation5], %s514_s6 }
  0x44   : > { %s1117_s4 = smov (!%p182_p4, %s181_s4), 2 }
  0x45   : > { %s930_s8 = sshll.u32 %s1117_s4, 8 }
  0x46   : > { %s187_s30 = ssub.s32 512, %s930_s8 }
  0x47   : > { %188 = vsyncadd %s933_s9, %s187_s30  ;;  %p518_p5 = scmp.ne.s32.totalorder %s930_s8, 0  ;;  %s544_s11 = sshll.u32 %s789_s16, 9 }
  0x48   : > { %s941_s23 = scalar_lea.hbm %s1086_s1, %s544_s11  ;;  %s195_s29 = sshll.u32 %s178_s10, 4  ;;  %s943_s29 = int_to_ptr.vmem [resolvable:$true] %s195_s29 }
  0x49   : > { %s651_s5 = scalar_lea.hbm %s941_s23, %s930_s8  ;;  %s655_s4 = scalar_lea.hbm %s1086_s1, 768 }
  0x4a   : > { %p652_p8 = scmp.ne.s32.totalorder %s941_s23, %s651_s5  ;;  %p656_p0 = scmp.lt.u32.totalorder %s941_s23, %s1086_s1 }
  0x4b   : > { %p657_p2 = scmp.lt.u32.totalorder %s655_s4, %s651_s5  ;;  %p659_p10 = scmp.lt.u32.totalorder %s651_s5, %s941_s23 }
  0x4c   : > { %p653_p9 = pnand %p652_p8, %p518_p5 }
  0x4d   : > { %p658_p6 = por %p657_p2, %p656_p0 }
  0x4e   : > { %p654_p11 = pneg %p653_p9 }
  0x4f   : > { %p660_p12 = por %p659_p10, %p658_p6 }
  0x51   : > { %p661_p13 = pnand %p660_p12, %p654_p11 }
  0x53   : > { %664 = shalt.err (!%p661_p13)
}
  0x54   : > { %s665_s10 = scalar_lea.vmem %s943_s29, %s930_s8  ;;  %s796_s11 = smov [#allocation5]  }
  0x55   : > { %p666_p1 = scmp.ne.s32.totalorder %s943_s29, %s665_s10  ;;  %s669_s21 = sshll.u32 %s796_s11, 4  ;;  %s670_s21 = int_to_ptr.vmem [resolvable:$false] %s669_s21 }
  0x56   : > { %s671_s6 = scalar_lea.vmem %s670_s21, 1024  ;;  %p672_p8 = scmp.lt.s32.totalorder %s943_s29, %s670_s21 }
  0x57   : > { %p667_p7 = pnand %p666_p1, %p518_p5  ;;  %p673_p9 = scmp.lt.s32.totalorder %s671_s6, %s665_s10 }
  0x59   : > { %p668_p4 = pneg %p667_p7  ;;  %p674_p0 = por %p673_p9, %p672_p8 }
  0x5b   : > { %p675_p2 = pnand %p674_p0, %p668_p4 }
  0x5d   : > { %678 = shalt.err (!%p675_p2)
}
  0x5e   : > { %s797_s5 = smov 256   ;;  %s798_s7 = smov 16  }
  0x5f   : > { %201 = dma.hbm_to_vmem [thread:$0]  (%p518_p5), %s941_s23, %s930_s8, %s943_s29, %s933_s9, %s797_s5, %s797_s5, %s798_s7  }
  0x60 PF: > { %p1102_p11 = scmp.ne.s32.totalorder %s1094_s22, 0 }
  0x61   : > { %s205_s4 = sand.u32 (%p1102_p11), 1, %s793_s17   ;;  %s207_s30 = sand.u32 (%p1102_p11), 1, %s781_s14  }
  0x62   : > { %204 = sbr.rel (!%p1102_p11) target bundleno = 133 (0x85), region = 28  ;;  %s523_s19 = sshll.u32 (%p1102_p11), %s207_s30, 5 }
  0x63   : > { %s524_s10 = sshll.u32 (%p1102_p11), %s789_s16, 1  ;;  %s978_s0 = scalar_lea.sflag (%p1102_p11), [#allocation6], %s205_s4 }
  0x64   : > { %s212_s11 = ssub.s32 (%p1102_p11), 3, %s524_s10  ;;  %s209_s8 = scalar_lea.vmem (%p1102_p11), [#allocation7], %s523_s19 }
  0x65   : > { %p213_p6 = scmp.lt.s32.totalorder (%p1102_p11), %s212_s11, 2 }
  0x69   : > { %s1119_s11 = smov (!%p213_p6, %s212_s11), 2 }
  0x6a   : > { %s975_s21 = sshll.u32 %s1119_s11, 8 }
  0x6b   : > { %s218_s6 = ssub.s32 512, %s975_s21 }
  0x6c   : > { %219 = vsyncadd %s978_s0, %s218_s6  ;;  %p527_p5 = scmp.ne.s32.totalorder %s975_s21, 0  ;;  %s547_s22 = sshll.u32 %s789_s16, 9 }
  0x6d   : > { %s986_s29 = scalar_lea.hbm %s1087_s2, %s547_s22  ;;  %s226_s5 = sshll.u32 %s209_s8, 4  ;;  %s988_s5 = int_to_ptr.vmem [resolvable:$true] %s226_s5 }
  0x6e   : > { %s679_s7 = scalar_lea.hbm %s986_s29, %s975_s21  ;;  %s683_s19 = scalar_lea.hbm %s1087_s2, 768 }
  0x6f   : > { %p680_p10 = scmp.ne.s32.totalorder %s986_s29, %s679_s7  ;;  %p684_p1 = scmp.lt.u32.totalorder %s986_s29, %s1087_s2 }
  0x70   : > { %p685_p7 = scmp.lt.u32.totalorder %s683_s19, %s679_s7  ;;  %p687_p8 = scmp.lt.u32.totalorder %s679_s7, %s986_s29 }
  0x71   : > { %p681_p12 = pnand %p680_p10, %p527_p5 }
  0x72   : > { %p686_p4 = por %p685_p7, %p684_p1 }
  0x73   : > { %p682_p13 = pneg %p681_p12 }
  0x74   : > { %p688_p9 = por %p687_p8, %p686_p4 }
  0x76   : > { %p689_p0 = pnand %p688_p9, %p682_p13 }
  0x78   : > { %692 = shalt.err (!%p689_p0)
}
  0x79   : > { %s693_s6 = scalar_lea.vmem %s988_s5, %s975_s21  ;;  %s799_s8 = smov [#allocation7]  }
  0x7a   : > { %p694_p2 = scmp.ne.s32.totalorder %s988_s5, %s693_s6  ;;  %s697_s22 = sshll.u32 %s799_s8, 4  ;;  %s698_s22 = int_to_ptr.vmem [resolvable:$false] %s697_s22 }
  0x7b   : > { %s699_s9 = scalar_lea.vmem %s698_s22, 1024  ;;  %p700_p10 = scmp.lt.s32.totalorder %s988_s5, %s698_s22 }
  0x7c   : > { %p695_p11 = pnand %p694_p2, %p527_p5  ;;  %p701_p12 = scmp.lt.s32.totalorder %s699_s9, %s693_s6 }
  0x7e   : > { %p696_p6 = pneg %p695_p11  ;;  %p702_p1 = por %p701_p12, %p700_p10 }
  0x80   : > { %p703_p7 = pnand %p702_p1, %p696_p6 }
  0x82   : > { %706 = shalt.err (!%p703_p7)
}
  0x83   : > { %s800_s23 = smov 256   ;;  %s801_s7 = smov 16  }
  0x84   : > { %232 = dma.hbm_to_vmem [thread:$0]  (%p527_p5), %s986_s29, %s975_s21, %s988_s5, %s978_s0, %s800_s23, %s800_s23, %s801_s7  }
  0x85 PF: > { %p1103_p13 = scmp.ne.s32.totalorder %s1098_s28, 0 }
  0x86   : > { %p1104_p4 = scmp.eq.s32.totalorder (!%p1103_p13), %s855_s18, 0 }
  0x87   : > { %238 = sbr.rel (%p1103_p13) target bundleno = 399 (0x18f), region = 32 }
  0x8e   : > { %760 = dma.done.wait (%p1104_p4), [#allocation3], 32   ;;  %p1105_p8 = pmov %p1104_p4 }
  0x8f   : > { %s244_s4 = sand.u32 1, %s855_s18   ;;  %s1023_s30 = sand.u32 1, %s777_s13  }
  0x90   : > { %762 = vsyncadd (%p1105_p8), [#allocation3], 4294967264  ;;  %s534_s19 = sshll.u32 %s1023_s30, 5  ;;  %s245_s0 = scalar_lea.sflag [#allocation6], %s244_s4 }
  0x91   : > { %s248_s21 = scalar_lea.vmem [#allocation5], %s534_s19  ;;  %p1106_p5 = scmp.ne.s32.totalorder %s1095_s24, 0 }
  0x93   : > { %764 = dma.done.wait (%p1106_p5), %s245_s0, 1024  }
  0x94   : > { %766 = vsyncadd (%p1106_p5), %s245_s0, 4294966272  ;;  %v310_v0 = vlaneseq  ;;  %s537_s28 = sshll.u32 %s785_s15, 4  ;;  %v300_v4 = vld [vmem:[%s248_s21] sm:$0xff]  ;;  %v301_v5 = vld [vmem:[%s248_s21 + $0x8] sm:$0xff]  ;;  %s257_s18 = scalar_lea.vmem [#allocation7], %s534_s19  ;;  %v802_v20 = vmov 0  }
  0x95   : > { %v313_v2 = vstv %s537_s28  ;;  %v302_v6 = vld [vmem:[%s248_s21 + $0x10] sm:$0xff]  ;;  %v303_v7 = vld [vmem:[%s248_s21 + $0x18] sm:$0xff]  ;;  %v304_v8 = vld [vmem:[%s257_s18] sm:$0xff]  ;;  %vm360_vm9 = vcmask 1040384   ;;  %s536_s24 = sshll.u32 %s1023_s30, 3  ;;  %s539_s10 = sshll.u32 %s785_s15, 7 }
  0x96   : > { %v311_v1 = vshrl.u32 %v310_v0, 7  ;;  %v305_v9 = vld [vmem:[%s257_s18 + $0x8] sm:$0xff]  ;;  %v306_v13 = vld [vmem:[%s257_s18 + $0x10] sm:$0xff]  ;;  %v307_v14 = vld [vmem:[%s257_s18 + $0x18] sm:$0xff]  ;;  %v334_v16 = vsub.f32 %v300_v4, %v304_v8  ;;  %s284_s29 = scalar_lea.vmem [#allocation8], %s536_s24  ;;  %s1038_s22 = scalar_lea.hbm %s1088_s3, %s539_s10 }
  0x97   : > { %v308_v15 = vld [vmem:[#allocation2] sm:$0x3]  ;;  %v335_v17 = vsub.f32 %v301_v5, %v305_v9  ;;  %v336_v19 = vsub.f32 %v302_v6, %v306_v13  ;;  %v337_v22 = vsub.f32 %v303_v7, %v307_v14  ;;  %s390_s5 = sshll.u32 %s284_s29, 4  ;;  %s376_s9 = scalar_lea.sflag [#allocation4], %s1023_s30  ;;  %s1033_s5 = int_to_ptr.vmem [resolvable:$true] %s390_s5 }
  0x98   : > { %v312_v3 = vadd.s32 8, %v311_v1  ;;  %v314_v10 = vadd.s32 %v313_v2, %v311_v1  ;;  %v322_v11 = vsub.s32 0, %v311_v1  ;;  %v326_v12 = vsub.s32 1, %v311_v1  ;;  %s707_s23 = scalar_lea.vmem %s1033_s5, 128  ;;  %p1107_p0 = scmp.ne.s32.totalorder %s1096_s25, 0 }
  0x99   : > { %vm318_vm0 = vcmp.gt.f32.partialorder %v308_v15, 0.5  ;;  %v338_v25 = vand.u32 2147483647, %v334_v16  ;;  %v339_v26 = vand.u32 2147483647, %v335_v17  ;;  %p708_p9 = scmp.ne.s32.totalorder %s1033_s5, %s707_s23  ;;  %s803_s15 = smov [#allocation8]  }
  0x9a   : > { %v315_v18 = vadd.s32 %v313_v2, %v312_v3  ;;  %v319_v21 = vsel %vm318_vm0, 1, %v802_v20  ;;  %vm316_vm1 = vcmp.lt.s32.totalorder %v314_v10, 18  ;;  %v340_v27 = vand.u32 2147483647, %v336_v19  ;;  %s711_s7 = sshll.u32 %s803_s15, 4  ;;  %s712_s7 = int_to_ptr.vmem [resolvable:$false] %s711_s7 }
  0x9b   : > { %v323_v23 = vrot.slane %v319_v21, %v322_v11  ;;  %v327_v24 = vrot.slane %v319_v21, %v326_v12  ;;  %v341_v28 = vand.u32 2147483647, %v337_v22  ;;  %p709_p2 = pnand %p708_p9, %p1107_p0  ;;  %s713_s4 = scalar_lea.vmem %s712_s7, 256 }
  0x9c   : > { %vm317_vm2 = vcmp.lt.s32.totalorder %v315_v18, 18  ;;  %p714_p6 = scmp.lt.s32.totalorder %s1033_s5, %s712_s7  ;;  %p715_p10 = scmp.lt.s32.totalorder %s713_s4, %s707_s23 }
  0x9d   : > { %vm328_vm3 = vcmp.eq.s32.totalorder %v323_v23, 1  ;;  %vm329_vm4 = vcmp.eq.s32.totalorder %v327_v24, 1  ;;  %p710_p11 = pneg %p709_p2 }
  0x9e   : > { %vm330_vm5 = vmand %vm316_vm1, %vm328_vm3  ;;  %p716_p12 = por %p715_p10, %p714_p6 }
  0x9f   : > { %vm331_vm6 = vmand %vm316_vm1, %vm329_vm4  ;;  %v342_v29 = vsel %vm330_vm5, %v338_v25, 0.0 }
  0xa0   : > { %vm332_vm7 = vmand %vm317_vm2, %vm328_vm3  ;;  %v343_v30 = vsel %vm331_vm6, %v339_v26, 0.0  ;;  %p717_p1 = pnand %p716_p12, %p710_p11 }
  0xa1   : > { %vm333_vm8 = vmand %vm317_vm2, %vm329_vm4  ;;  %v344_v31 = vsel %vm332_vm7, %v340_v27, 0.0 }
  0xa2   : > { %v345_v32 = vsel %vm333_vm8, %v341_v28, 0.0  ;;  %v346_v33 = vadd.f32 %v344_v31, %v342_v29 }
  0xa3   : > { %v353_v34 = vadd.f32 %v345_v32, %v343_v30 }
  0xa4   : > { %v347_v35 = vrot.slane %v346_v33, 4 }
  0xa5   : > { %v354_v36 = vrot.slane %v353_v34, 4 }
  0xa6   : > { %v348_v37 = vadd.f32 %v347_v35, %v346_v33 }
  0xa7   : > { %v355_v38 = vadd.f32 %v354_v36, %v353_v34 }
  0xa8   : > { %v349_v39 = vrot.slane %v348_v37, 2 }
  0xa9   : > { %v356_v40 = vrot.slane %v355_v38, 2 }
  0xaa   : > { %v350_v41 = vadd.f32 %v349_v39, %v348_v37 }
  0xab   : > { %v357_v42 = vadd.f32 %v356_v40, %v355_v38 }
  0xac   : > { %v351_v43 = vrot.slane %v350_v41, 1 }
  0xad   : > { %v358_v44 = vrot.slane %v357_v42, 1 }
  0xae   : > { %v352_v45 = vadd.f32 %v351_v43, %v350_v41 }
  0xaf   : > { %v359_v46 = vadd.f32 %v358_v44, %v357_v42 }
  0xb0   : > { %v361_v47 = vsel %vm360_vm9, %v352_v45, 0.0 }
  0xb1   : > { %v362_v48 = vsel %vm360_vm9, %v359_v46, 0.0 }
  0xb2   : > { %v363_v49 = vadd.f32 %v362_v48, %v361_v47 }
  0xb4   : > { %364 = vadd.xlane.f32.xlu0 %v363_v49 }
 0x141   : > { %v365_v50 = vpop.xlane.xlu0 %364 }
 0x142   : > { %v366_v51 = vrot.slane %v365_v50, 4 }
 0x144   : > { %v367_v52 = vadd.f32 %v366_v51, %v365_v50 }
 0x146   : > { %v368_v53 = vrot.slane %v367_v52, 2 }
 0x148   : > { %v369_v54 = vadd.f32 %v368_v53, %v367_v52 }
 0x14a   : > { %v370_v55 = vrot.slane %v369_v54, 1 }
 0x14c   : > { %v371_v56 = vadd.f32 %v370_v55, %v369_v54 }
 0x14e   : > { %548 = vpush %v371_v56 }
 0x17f   : > { %s549_s11 = spop %548 }
 0x180   : > { %v373_v57 = vstv %s549_s11 }
 0x181   : > { %374 = vst [vmem:[%s284_s29] sm:$0xff] %v373_v57 }
 0x182   : > { %720 = shalt.err (!%p717_p1)
}
 0x183   : > { %s721_s30 = scalar_lea.hbm %s1038_s22, 128  ;;  %s725_s21 = scalar_lea.hbm %s1088_s3, 256 }
 0x184   : > { %p722_p7 = scmp.ne.s32.totalorder %s1038_s22, %s721_s30  ;;  %p726_p8 = scmp.lt.u32.totalorder %s1038_s22, %s1088_s3 }
 0x185   : > { %p727_p5 = scmp.lt.u32.totalorder %s725_s21, %s721_s30  ;;  %p729_p2 = scmp.lt.u32.totalorder %s721_s30, %s1038_s22 }
 0x186   : > { %p723_p13 = pnand %p722_p7, %p1107_p0 }
 0x187   : > { %p728_p9 = por %p727_p5, %p726_p8 }
 0x188   : > { %p724_p4 = pneg %p723_p13 }
 0x189   : > { %p730_p11 = por %p729_p2, %p728_p9 }
 0x18b   : > { %p731_p6 = pnand %p730_p11, %p724_p4 }
 0x18d   : > { %734 = shalt.err (!%p731_p6)
}
 0x18e   : > { %556 = dma.vmem_to_hbm [thread:$0]  (%p1107_p0), %s1033_s5, 128, %s1038_s22, %s376_s9  }
 0x18f PF: > { %s402_s24 = sand.u32 1, %s773_s12   ;;  %p1108_p10 = scmp.ne.s32.totalorder %s1097_s27, 0 }
 0x190   : > { %s403_s29 = scalar_lea.sflag [#allocation4], %s402_s24 }
 0x191   : > { %p563_p12 = pnand %p513_p3, %p1108_p10 }
 0x193   : > { %768 = dma.done.wait (!%p563_p12), %s403_s29, 128  }
 0x194   : > { %770 = vsyncadd (!%p563_p12), %s403_s29, 4294967168  ;;  %s20_s17 = sadd.s32 1, %s793_s17   ;;  %s1109_s12 = smov %s777_s13 }
 0x195   : > { %p17_p1 = scmp.ge.s32.totalorder %s20_s17, 4   ;;  %s1110_s13 = smov %s781_s14 }
 0x196   : > { %s1111_s14 = smov %s886_s26  ;;  %s1112_s15 = smov %s789_s16 }
 0x197   : > { %s1113_s16 = smov %s1115_s20  ;;  %19 = sbr.rel (!%p17_p1) target bundleno = 9 (0x9), region = 94 }
 0x19e   :  { %408 = vsyncpa [#allocation3], 1 }
 0x19f   :  { %410 = vsyncpa [#allocation3 + $0x1], 1 }
 0x1a0   :  { %411 = vsyncpa [#allocation6], 1 }
 0x1a1   :  { %413 = vsyncpa [#allocation6 + $0x1], 1 }
 0x1a2   :  { %414 = vsyncpa [#allocation4], 1 }
 0x1a3   :  { %416 = vsyncpa [#allocation4 + $0x1], 1 }

</bundles_post_ra>
